<compile_context>
chip_gen: v6e
topology: v6e:2x2x1
jax: 0.10.0
libtpu: 0.0.40
codegen_flags: <defaults>
</compile_context>

<pallas_src>
import functools
import numpy as np
import jax
import jax.numpy as jnp
from jax import lax
from jax.experimental import pallas as pl
from jax.experimental.pallas import tpu as pltpu


_LW = 128               # lane width of the flattened scd slabs (lane-dense)
_MAX_BLOCK_ROWS = 4096  # 4096*128*4 B = 2 MiB per input block


def _round_up(x, m):
    return ((x + m - 1) // m) * m


def _num_tensorcores():
    """2 on megacore-style devices (v7x / v4 / v5p), 1 on single-TC chips (v5e / v6e)."""
    try:
        kind = jax.devices()[0].device_kind.lower()
    except Exception:
        return 1
    if "v7" in kind or "v4" in kind or "v5p" in kind:
        return 2
    return 1


# ---------------------------------------------------------------------------
# scd-order kernels: tiled sum-of-squares over the raw interleaved data
# ---------------------------------------------------------------------------

def _scd_diff_kernel(x_ref, y_ref, out_ref, *, rows_total, block_rows):
    """Accumulate sum((x - y)^2) of this (block_rows, 128) tile into the (8,128) output."""
    c = pl.program_id(0)
    i = pl.program_id(1)
    steps = pl.num_programs(1)

    @pl.when(i == 0)
    def _init():
        out_ref[...] = jnp.zeros_like(out_ref)

    d = x_ref[...].astype(jnp.float32) - y_ref[...].astype(jnp.float32)
    sq = d * d
    row0 = (c * steps + i) * block_rows

    @pl.when(row0 + block_rows <= rows_total)
    def _full():
        out_ref[...] += jnp.sum(sq.reshape(-1, 8, _LW), axis=0)

    @pl.when(row0 + block_rows > rows_total)
    def _tail():
        rows = row0 + lax.broadcasted_iota(jnp.int32, sq.shape, 0)
        masked = jnp.where(rows < rows_total, sq, 0.0)
        out_ref[...] += jnp.sum(masked.reshape(-1, 8, _LW), axis=0)


def _scd_sq_kernel(y_ref, out_ref, *, rows_total, block_rows):
    """input is None path: accumulate sum(y^2); only the target is streamed."""
    c = pl.program_id(0)
    i = pl.program_id(1)
    steps = pl.num_programs(1)

    @pl.when(i == 0)
    def _init():
        out_ref[...] = jnp.zeros_like(out_ref)

    y = y_ref[...].astype(jnp.float32)
    sq = y * y
    row0 = (c * steps + i) * block_rows

    @pl.when(row0 + block_rows <= rows_total)
    def _full():
        out_ref[...] += jnp.sum(sq.reshape(-1, 8, _LW), axis=0)

    @pl.when(row0 + block_rows > rows_total)
    def _tail():
        rows = row0 + lax.broadcasted_iota(jnp.int32, sq.shape, 0)
        masked = jnp.where(rows < rows_total, sq, 0.0)
        out_ref[...] += jnp.sum(masked.reshape(-1, 8, _LW), axis=0)


def _tiled_sum_sq(kernel, arrays):
    """Tiled, pipelined sum-of-squares reduction over the flat views of `arrays`."""
    n = int(np.prod(arrays[0].shape))
    rows = -(-n // _LW)

    ncores = _num_tensorcores()
    rows_per_core = -(-rows // ncores)
    br = min(_MAX_BLOCK_ROWS, _round_up(max(rows_per_core, 8), 8))
    steps = -(-rows_per_core // br)

    # Pad ONLY when the slab is smaller than one block or has a lane remainder; for any
    # sizeable input the slab is streamed unpadded and the ragged tail is masked in-kernel.
    slab_rows = max(rows, br)
    pad = slab_rows * _LW - n
    mats = []
    for a in arrays:
        flat = a.reshape(-1)
        if pad:
            # TODO(synk): lane-remainder / tiny-slab case only; zeros contribute 0 to the sum.
            flat = jnp.pad(flat, (0, pad))
        mats.append(flat.reshape(slab_rows, _LW))

    nblocks = -(-slab_rows // br)

    def idx_map(c, i):
        # Clamp fully-out-of-bounds block indices (possible with the 2-core split on tiny
        # inputs); their contribution is masked to zero inside the kernel.
        return (jnp.minimum(c * steps + i, nblocks - 1), 0)

    in_spec = pl.BlockSpec((br, _LW), idx_map)

    out = pl.pallas_call(
        functools.partial(kernel, rows_total=slab_rows, block_rows=br),
        out_shape=jax.ShapeDtypeStruct((ncores, 8, _LW), jnp.float32),
        grid_spec=pltpu.PrefetchScalarGridSpec(
            num_scalar_prefetch=0,
            grid=(ncores, steps),
            in_specs=[in_spec] * len(mats),
            out_specs=pl.BlockSpec((None, 8, _LW), lambda c, i: (c, 0, 0)),
        ),
        compiler_params=pltpu.CompilerParams(
            dimension_semantics=("parallel", "arbitrary")),
    )(*mats)
    return jnp.sum(out)


# ---------------------------------------------------------------------------
# fst-order kernels: per-pair grid, resident f tensors, in-kernel xi_idx gather
# ---------------------------------------------------------------------------

def _fst_kernel(xi_ref, is_ref, ts_ref, if_ref, tf_ref, out_ref):
    """One xi pair per grid step.
    s refs: (2, R, L) planar [re, im] for channel p.  f refs: fully resident (K, 2, R, L).
    out_ref: resident (R, L) f32 accumulator of |gap|^2 partials (reduced outside)."""
    p = pl.program_id(0)

    @pl.when(p == 0)
    def _init():
        out_ref[...] = jnp.zeros_like(out_ref)

    i0 = xi_ref[p, 0]
    i1 = xi_ref[p, 1]

    isv = is_ref[...].astype(jnp.float32)      # (2, R, L)
    tsv = ts_ref[...].astype(jnp.float32)
    if0 = if_ref[i0].astype(jnp.float32)       # in-kernel channel gather (VMEM-resident)
    if1 = if_ref[i1].astype(jnp.float32)
    tf0 = tf_ref[i0].astype(jnp.float32)
    tf1 = tf_ref[i1].astype(jnp.float32)

    sgr, sgi = isv[0] - tsv[0], isv[1] - tsv[1]
    fg0r, fg0i = if0[0] - tf0[0], if0[1] - tf0[1]
    fg1r, fg1i = if1[0] - tf1[0], if1[1] - tf1[1]
    tf0r, tf0i = tf0[0], tf0[1]
    tf1r, tf1i = tf1[0], tf1[1]

    # err0 = f_gap0 * conj(t_f1)
    e0r = fg0r * tf1r + fg0i * tf1i
    e0i = fg0i * tf1r - fg0r * tf1i
    # err1 = t_f0 * conj(f_gap1)
    e1r = tf0r * fg1r + tf0i * fg1i
    e1i = tf0i * fg1r - tf0r * fg1i

    gr = sgr - e0r - e1r
    gi = sgi - e0i - e1i
    out_ref[...] += gr * gr + gi * gi


def _fst_none_kernel(xi_ref, ts_ref, tf_ref, out_ref):
    """input is None => gap = -(t_s - 2 * t_f0 * conj(t_f1)); stream only the target."""
    p = pl.program_id(0)

    @pl.when(p == 0)
    def _init():
        out_ref[...] = jnp.zeros_like(out_ref)

    i0 = xi_ref[p, 0]
    i1 = xi_ref[p, 1]

    tsv = ts_ref[...].astype(jnp.float32)
    tf0 = tf_ref[i0].astype(jnp.float32)
    tf1 = tf_ref[i1].astype(jnp.float32)
    tf0r, tf0i = tf0[0], tf0[1]
    tf1r, tf1i = tf1[0], tf1[1]

    pr = tf0r * tf1r + tf0i * tf1i     # Re(t_f0 * conj(t_f1))
    pi = tf0i * tf1r - tf0r * tf1i     # Im(t_f0 * conj(t_f1))
    gr = tsv[0] - 2.0 * pr
    gi = tsv[1] - 2.0 * pi
    out_ref[...] += gr * gr + gi * gi


def _planar(x):
    """(B, C, T, 2) -> (C, 2, rows, lanes): planar re/im with the gather axis leading and a
    lane-dense (B*T/128, 128) fold of the last two dims when divisible (free reshape)."""
    B, C, T, _ = x.shape
    y = jnp.transpose(x, (1, 3, 0, 2))         # (C, 2, B, T); one XLA pass per tensor
    if (B * T) % _LW == 0:
        y = y.reshape(C, 2, (B * T) // _LW, _LW)
    return y


def _fst_sum_sq(xi_idx, i_f, i_s, t_f, t_s):
    P = t_s.shape[1]
    K = t_f.shape[1]
    xi = jnp.asarray(xi_idx, dtype=jnp.int32)             # (P, 2) scalar-prefetch operand

    ts_p = _planar(t_s)                                    # (P, 2, R, L)
    tf_p = _planar(t_f)                                    # (K, 2, R, L)
    R, L = ts_p.shape[2], ts_p.shape[3]

    spec_s = pl.BlockSpec((None, 2, R, L), lambda p, xi_ref: (p, 0, 0, 0))
    spec_f = pl.BlockSpec((K, 2, R, L), lambda p, xi_ref: (0, 0, 0, 0))   # resident
    out_spec = pl.BlockSpec((R, L), lambda p, xi_ref: (0, 0))             # resident accumulator

    if i_f is None:
        kernel = _fst_none_kernel
        operands = (ts_p, tf_p)
        in_specs = [spec_s, spec_f]
    else:
        is_p = _planar(i_s)
        if_p = _planar(i_f)
        kernel = _fst_kernel
        operands = (is_p, ts_p, if_p, tf_p)
        in_specs = [spec_s, spec_s, spec_f, spec_f]

    out = pl.pallas_call(
        kernel,
        out_shape=jax.ShapeDtypeStruct((R, L), jnp.float32),
        grid_spec=pltpu.PrefetchScalarGridSpec(
            num_scalar_prefetch=1,
            grid=(P,),
            in_specs=in_specs,
            out_specs=out_spec,
        ),
        compiler_params=pltpu.CompilerParams(dimension_semantics=("arbitrary",)),
    )(xi, *operands)
    return jnp.sum(out)


# ---------------------------------------------------------------------------
# Module-level glue (mirrors MSELoss)
# ---------------------------------------------------------------------------

class Phi:
    """Minimal stand-in for the `phi` object used by MSELoss."""

    def __init__(self, xi_idx, fst_order):
        self.xi_idx = xi_idx          # int32 [P, 2]
        self.fst_order = fst_order    # bool


class MSELoss:
    def __init__(self, phi):
        self.phi = phi

    def scd_order_mse(self, input, target):
        target_scd, = target
        n_complex = int(np.prod(target_scd.shape[:-1]))          # B*C*T complex elements
        if input is None:
            total = _tiled_sum_sq(_scd_sq_kernel, [target_scd])
        else:
            input_scd, = input
            total = _tiled_sum_sq(_scd_diff_kernel, [input_scd, target_scd])
        return total / n_complex

    def fst_order_mse(self, input, target):
        t_f, t_s = target
        if input is None:
            i_f = i_s = None
        else:
            i_f, i_s = input
        total = _fst_sum_sq(self.phi.xi_idx, i_f, i_s, t_f, t_s)
        n_complex = int(np.prod(t_s.shape[:-1]))                  # B*P*T complex elements
        return total / n_complex

    def forward(self, input, target):
        if self.phi.fst_order:
            return self.fst_order_mse(input, target)
        return self.scd_order_mse(input, target)

    __call__ = forward


# ---------------------------------------------------------------------------
# Reference (pure numpy) for verification
# ---------------------------------------------------------------------------

def _to_c(x):
    x = np.asarray(x)
    return x[..., 0] + 1j * x[..., 1]


def ref_fst_order(xi_idx, i_f, i_s, t_f, t_s):
    i_fc, i_sc, t_fc, t_sc = map(_to_c, (i_f, i_s, t_f, t_s))
    idx0 = np.asarray(xi_idx)[:, 0]
    idx1 = np.asarray(xi_idx)[:, 1]
    s_gap = i_sc - t_sc
    f_gap = i_fc - t_fc
    err0 = f_gap[:, idx0] * np.conj(t_fc[:, idx1])
    err1 = t_fc[:, idx0] * np.conj(f_gap[:, idx1])
    gap = s_gap - err0 - err1
    return np.mean(np.abs(gap) ** 2)


def ref_scd_order(i_scd, t_scd):
    gap = _to_c(i_scd) - _to_c(t_scd)
    return np.mean(np.abs(gap) ** 2)


# ---------------------------------------------------------------------------
# Main
# ---------------------------------------------------------------------------

if __name__ == "__main__":
    B, K, P, T = 2, 8, 6, 128   # batch, 1st-order channels, xi pairs, time samples

    key = jax.random.PRNGKey(0)
    k1, k2, k3, k4 = jax.random.split(key, 4)
    i_f = jax.random.normal(k1, (B, K, T, 2), dtype=jnp.float32)
    t_f = jax.random.normal(k2, (B, K, T, 2), dtype=jnp.float32)
    i_s = jax.random.normal(k3, (B, P, T, 2), dtype=jnp.float32)
    t_s = jax.random.normal(k4, (B, P, T, 2), dtype=jnp.float32)

    xi_idx = jnp.array([[0, 1], [1, 2], [2, 3], [3, 4], [4, 5], [5, 6]],
                       dtype=jnp.int32)   # [P, 2], deterministic

    # --- first-order branch ---
    loss_fst = MSELoss(Phi(xi_idx, fst_order=True))
    out_fst = jax.block_until_ready(loss_fst((i_f, i_s), (t_f, t_s)))
    ref_fst = ref_fst_order(xi_idx, i_f, i_s, t_f, t_s)
    np.testing.assert_allclose(np.asarray(out_fst), ref_fst, rtol=1e-4, atol=1e-4)

    # --- second-order branch ---
    loss_scd = MSELoss(Phi(xi_idx, fst_order=False))
    out_scd = jax.block_until_ready(loss_scd((i_s,), (t_s,)))
    np.testing.assert_allclose(np.asarray(out_scd), ref_scd_order(i_s, t_s),
                               rtol=1e-4, atol=1e-4)

    # --- input=None paths (specialized target-only kernels) ---
    out_fst_none = jax.block_until_ready(loss_fst(None, (t_f, t_s)))
    ref_none = ref_fst_order(xi_idx, np.zeros_like(np.asarray(i_f)),
                             np.zeros_like(np.asarray(i_s)), t_f, t_s)
    np.testing.assert_allclose(np.asarray(out_fst_none), ref_none, rtol=1e-4, atol=1e-4)

    out_scd_none = jax.block_until_ready(loss_scd(None, (t_s,)))
    ref_scd_none = ref_scd_order(np.zeros_like(np.asarray(t_s)), t_s)
    np.testing.assert_allclose(np.asarray(out_scd_none), ref_scd_none, rtol=1e-4, atol=1e-4)

    print("KERNEL_OK")
</pallas_src>

<mosaic_0001>
module attributes {stable_mosaic.version = 11 : i64} {
  func.func @_fst_kernel(%arg0: i32, %arg1: memref<6x2xi32, #tpu.memory_space<smem>>, %arg2: memref<1x2x2x128xf32, #tpu.memory_space<vmem>>, %arg3: memref<1x2x2x128xf32, #tpu.memory_space<vmem>>, %arg4: memref<8x2x2x128xf32, #tpu.memory_space<vmem>>, %arg5: memref<8x2x2x128xf32, #tpu.memory_space<vmem>>, %arg6: memref<2x128xf32, #tpu.memory_space<vmem>>) attributes {dimension_semantics = [#tpu.dimension_semantics<arbitrary>], iteration_bounds = array<i64: 6>, scalar_prefetch = 1 : i64, scratch_operands = 0 : i64, tpu.core_type = #tpu.core_type<tc>, window_params = [{transform_indices = @transform_0, window_bounds = array<i64: 1, 2, 2, 128>}, {transform_indices = @transform_1, window_bounds = array<i64: 1, 2, 2, 128>}, {pipeline_mode = #tpu.pipeline_mode<synchronous>, transform_indices = @transform_2, window_bounds = array<i64: 8, 2, 2, 128>}, {pipeline_mode = #tpu.pipeline_mode<synchronous>, transform_indices = @transform_3, window_bounds = array<i64: 8, 2, 2, 128>}, {pipeline_mode = #tpu.pipeline_mode<synchronous>, transform_indices = @transform_4, window_bounds = array<i64: 2, 128>}]} {
    %c0_i32 = arith.constant 0 : i32
    %0 = arith.cmpi eq, %arg0, %c0_i32 : i32
    %1 = arith.extui %0 : i1 to i32
    %c0_i32_0 = arith.constant 0 : i32
    %2 = arith.cmpi ne, %1, %c0_i32_0 : i32
    scf.if %2 {
      %cst = arith.constant 0.000000e+00 : f32
      %83 = vector.broadcast %cst : f32 to vector<2x128xf32>
      %c0_25 = arith.constant 0 : index
      %c0_26 = arith.constant 0 : index
      %84 = vector.load %arg6[%c0_25, %c0_26] : memref<2x128xf32, #tpu.memory_space<vmem>>, vector<2x128xf32>
      tpu.vector_store %arg6[%c0_25, %c0_26], %83 {strides = array<i32>} : memref<2x128xf32, #tpu.memory_space<vmem>>, vector<2x128xf32>,
    } else {
    }
    %3 = arith.index_cast %arg0 : i32 to index
    %c0 = arith.constant 0 : index
    %4 = memref.load %arg1[%3, %c0] : memref<6x2xi32, #tpu.memory_space<smem>>
    %5 = arith.index_cast %arg0 : i32 to index
    %c1 = arith.constant 1 : index
    %6 = memref.load %arg1[%5, %c1] : memref<6x2xi32, #tpu.memory_space<smem>>
    %c0_1 = arith.constant 0 : index
    %c0_2 = arith.constant 0 : index
    %c0_3 = arith.constant 0 : index
    %c0_4 = arith.constant 0 : index
    %7 = vector.load %arg2[%c0_1, %c0_2, %c0_3, %c0_4] : memref<1x2x2x128xf32, #tpu.memory_space<vmem>>, vector<1x2x2x128xf32>
    %8 = vector.shape_cast %7 : vector<1x2x2x128xf32> to vector<2x2x128xf32>
    %c0_5 = arith.constant 0 : index
    %c0_6 = arith.constant 0 : index
    %c0_7 = arith.constant 0 : index
    %c0_8 = arith.constant 0 : index
    %9 = vector.load %arg3[%c0_5, %c0_6, %c0_7, %c0_8] : memref<1x2x2x128xf32, #tpu.memory_space<vmem>>, vector<1x2x2x128xf32>
    %10 = vector.shape_cast %9 : vector<1x2x2x128xf32> to vector<2x2x128xf32>
    %11 = arith.index_cast %4 : i32 to index
    %c0_9 = arith.constant 0 : index
    %c0_10 = arith.constant 0 : index
    %c0_11 = arith.constant 0 : index
    %12 = vector.load %arg4[%11, %c0_9, %c0_10, %c0_11] : memref<8x2x2x128xf32, #tpu.memory_space<vmem>>, vector<1x2x2x128xf32>
    %13 = vector.shape_cast %12 : vector<1x2x2x128xf32> to vector<2x2x128xf32>
    %14 = arith.index_cast %6 : i32 to index
    %c0_12 = arith.constant 0 : index
    %c0_13 = arith.constant 0 : index
    %c0_14 = arith.constant 0 : index
    %15 = vector.load %arg4[%14, %c0_12, %c0_13, %c0_14] : memref<8x2x2x128xf32, #tpu.memory_space<vmem>>, vector<1x2x2x128xf32>
    %16 = vector.shape_cast %15 : vector<1x2x2x128xf32> to vector<2x2x128xf32>
    %17 = arith.index_cast %4 : i32 to index
    %c0_15 = arith.constant 0 : index
    %c0_16 = arith.constant 0 : index
    %c0_17 = arith.constant 0 : index
    %18 = vector.load %arg5[%17, %c0_15, %c0_16, %c0_17] : memref<8x2x2x128xf32, #tpu.memory_space<vmem>>, vector<1x2x2x128xf32>
    %19 = vector.shape_cast %18 : vector<1x2x2x128xf32> to vector<2x2x128xf32>
    %20 = arith.index_cast %6 : i32 to index
    %c0_18 = arith.constant 0 : index
    %c0_19 = arith.constant 0 : index
    %c0_20 = arith.constant 0 : index
    %21 = vector.load %arg5[%20, %c0_18, %c0_19, %c0_20] : memref<8x2x2x128xf32, #tpu.memory_space<vmem>>, vector<1x2x2x128xf32>
    %22 = vector.shape_cast %21 : vector<1x2x2x128xf32> to vector<2x2x128xf32>
    %23 = vector.extract_strided_slice %8 {offsets = [0, 0, 0], sizes = [1, 2, 128], strides = [1, 1, 1]} : vector<2x2x128xf32> to vector<1x2x128xf32>
    %24 = vector.shape_cast %23 : vector<1x2x128xf32> to vector<2x128xf32>
    %25 = vector.extract_strided_slice %10 {offsets = [0, 0, 0], sizes = [1, 2, 128], strides = [1, 1, 1]} : vector<2x2x128xf32> to vector<1x2x128xf32>
    %26 = vector.shape_cast %25 : vector<1x2x128xf32> to vector<2x128xf32>
    %27 = arith.subf %24, %26 : vector<2x128xf32>
    %28 = vector.extract_strided_slice %8 {offsets = [1, 0, 0], sizes = [1, 2, 128], strides = [1, 1, 1]} : vector<2x2x128xf32> to vector<1x2x128xf32>
    %29 = vector.shape_cast %28 : vector<1x2x128xf32> to vector<2x128xf32>
    %30 = vector.extract_strided_slice %10 {offsets = [1, 0, 0], sizes = [1, 2, 128], strides = [1, 1, 1]} : vector<2x2x128xf32> to vector<1x2x128xf32>
    %31 = vector.shape_cast %30 : vector<1x2x128xf32> to vector<2x128xf32>
    %32 = arith.subf %29, %31 : vector<2x128xf32>
    %33 = vector.extract_strided_slice %13 {offsets = [0, 0, 0], sizes = [1, 2, 128], strides = [1, 1, 1]} : vector<2x2x128xf32> to vector<1x2x128xf32>
    %34 = vector.shape_cast %33 : vector<1x2x128xf32> to vector<2x128xf32>
    %35 = vector.extract_strided_slice %19 {offsets = [0, 0, 0], sizes = [1, 2, 128], strides = [1, 1, 1]} : vector<2x2x128xf32> to vector<1x2x128xf32>
    %36 = vector.shape_cast %35 : vector<1x2x128xf32> to vector<2x128xf32>
    %37 = arith.subf %34, %36 : vector<2x128xf32>
    %38 = vector.extract_strided_slice %13 {offsets = [1, 0, 0], sizes = [1, 2, 128], strides = [1, 1, 1]} : vector<2x2x128xf32> to vector<1x2x128xf32>
    %39 = vector.shape_cast %38 : vector<1x2x128xf32> to vector<2x128xf32>
    %40 = vector.extract_strided_slice %19 {offsets = [1, 0, 0], sizes = [1, 2, 128], strides = [1, 1, 1]} : vector<2x2x128xf32> to vector<1x2x128xf32>
    %41 = vector.shape_cast %40 : vector<1x2x128xf32> to vector<2x128xf32>
    %42 = arith.subf %39, %41 : vector<2x128xf32>
    %43 = vector.extract_strided_slice %16 {offsets = [0, 0, 0], sizes = [1, 2, 128], strides = [1, 1, 1]} : vector<2x2x128xf32> to vector<1x2x128xf32>
    %44 = vector.shape_cast %43 : vector<1x2x128xf32> to vector<2x128xf32>
    %45 = vector.extract_strided_slice %22 {offsets = [0, 0, 0], sizes = [1, 2, 128], strides = [1, 1, 1]} : vector<2x2x128xf32> to vector<1x2x128xf32>
    %46 = vector.shape_cast %45 : vector<1x2x128xf32> to vector<2x128xf32>
    %47 = arith.subf %44, %46 : vector<2x128xf32>
    %48 = vector.extract_strided_slice %16 {offsets = [1, 0, 0], sizes = [1, 2, 128], strides = [1, 1, 1]} : vector<2x2x128xf32> to vector<1x2x128xf32>
    %49 = vector.shape_cast %48 : vector<1x2x128xf32> to vector<2x128xf32>
    %50 = vector.extract_strided_slice %22 {offsets = [1, 0, 0], sizes = [1, 2, 128], strides = [1, 1, 1]} : vector<2x2x128xf32> to vector<1x2x128xf32>
    %51 = vector.shape_cast %50 : vector<1x2x128xf32> to vector<2x128xf32>
    %52 = arith.subf %49, %51 : vector<2x128xf32>
    %53 = vector.extract_strided_slice %19 {offsets = [0, 0, 0], sizes = [1, 2, 128], strides = [1, 1, 1]} : vector<2x2x128xf32> to vector<1x2x128xf32>
    %54 = vector.shape_cast %53 : vector<1x2x128xf32> to vector<2x128xf32>
    %55 = vector.extract_strided_slice %19 {offsets = [1, 0, 0], sizes = [1, 2, 128], strides = [1, 1, 1]} : vector<2x2x128xf32> to vector<1x2x128xf32>
    %56 = vector.shape_cast %55 : vector<1x2x128xf32> to vector<2x128xf32>
    %57 = vector.extract_strided_slice %22 {offsets = [0, 0, 0], sizes = [1, 2, 128], strides = [1, 1, 1]} : vector<2x2x128xf32> to vector<1x2x128xf32>
    %58 = vector.shape_cast %57 : vector<1x2x128xf32> to vector<2x128xf32>
    %59 = vector.extract_strided_slice %22 {offsets = [1, 0, 0], sizes = [1, 2, 128], strides = [1, 1, 1]} : vector<2x2x128xf32> to vector<1x2x128xf32>
    %60 = vector.shape_cast %59 : vector<1x2x128xf32> to vector<2x128xf32>
    %61 = arith.mulf %37, %58 : vector<2x128xf32>
    %62 = arith.mulf %42, %60 : vector<2x128xf32>
    %63 = arith.addf %61, %62 : vector<2x128xf32>
    %64 = arith.mulf %42, %58 : vector<2x128xf32>
    %65 = arith.mulf %37, %60 : vector<2x128xf32>
    %66 = arith.subf %64, %65 : vector<2x128xf32>
    %67 = arith.mulf %54, %47 : vector<2x128xf32>
    %68 = arith.mulf %56, %52 : vector<2x128xf32>
    %69 = arith.addf %67, %68 : vector<2x128xf32>
    %70 = arith.mulf %56, %47 : vector<2x128xf32>
    %71 = arith.mulf %54, %52 : vector<2x128xf32>
    %72 = arith.subf %70, %71 : vector<2x128xf32>
    %73 = arith.subf %27, %63 : vector<2x128xf32>
    %74 = arith.subf %73, %69 : vector<2x128xf32>
    %75 = arith.subf %32, %66 : vector<2x128xf32>
    %76 = arith.subf %75, %72 : vector<2x128xf32>
    %c0_21 = arith.constant 0 : index
    %c0_22 = arith.constant 0 : index
    %77 = vector.load %arg6[%c0_21, %c0_22] : memref<2x128xf32, #tpu.memory_space<vmem>>, vector<2x128xf32>
    %78 = arith.mulf %74, %74 : vector<2x128xf32>
    %79 = arith.mulf %76, %76 : vector<2x128xf32>
    %80 = arith.addf %78, %79 : vector<2x128xf32>
    %81 = arith.addf %77, %80 : vector<2x128xf32>
    %c0_23 = arith.constant 0 : index
    %c0_24 = arith.constant 0 : index
    %82 = vector.load %arg6[%c0_23, %c0_24] : memref<2x128xf32, #tpu.memory_space<vmem>>, vector<2x128xf32>
    tpu.vector_store %arg6[%c0_23, %c0_24], %81 {strides = array<i32>} : memref<2x128xf32, #tpu.memory_space<vmem>>, vector<2x128xf32>,
    return
  }
  func.func @transform_0(%arg0: i32, %arg1: memref<6x2xi32, #tpu.memory_space<smem>>) -> (i32, i32, i32, i32) {
    %c0_i32 = arith.constant 0 : i32
    %c0_i32_0 = arith.constant 0 : i32
    %c0_i32_1 = arith.constant 0 : i32
    %c0_i32_2 = arith.constant 0 : i32
    return %arg0, %c0_i32, %c0_i32_0, %c0_i32_1 : i32, i32, i32, i32
  }
  func.func @transform_1(%arg0: i32, %arg1: memref<6x2xi32, #tpu.memory_space<smem>>) -> (i32, i32, i32, i32) {
    %c0_i32 = arith.constant 0 : i32
    %c0_i32_0 = arith.constant 0 : i32
    %c0_i32_1 = arith.constant 0 : i32
    %c0_i32_2 = arith.constant 0 : i32
    return %arg0, %c0_i32, %c0_i32_0, %c0_i32_1 : i32, i32, i32, i32
  }
  func.func @transform_2(%arg0: i32, %arg1: memref<6x2xi32, #tpu.memory_space<smem>>) -> (i32, i32, i32, i32) {
    %c0_i32 = arith.constant 0 : i32
    %c0_i32_0 = arith.constant 0 : i32
    %c0_i32_1 = arith.constant 0 : i32
    %c0_i32_2 = arith.constant 0 : i32
    %c0_i32_3 = arith.constant 0 : i32
    return %c0_i32, %c0_i32_0, %c0_i32_1, %c0_i32_2 : i32, i32, i32, i32
  }
  func.func @transform_3(%arg0: i32, %arg1: memref<6x2xi32, #tpu.memory_space<smem>>) -> (i32, i32, i32, i32) {
    %c0_i32 = arith.constant 0 : i32
    %c0_i32_0 = arith.constant 0 : i32
    %c0_i32_1 = arith.constant 0 : i32
    %c0_i32_2 = arith.constant 0 : i32
    %c0_i32_3 = arith.constant 0 : i32
    return %c0_i32, %c0_i32_0, %c0_i32_1, %c0_i32_2 : i32, i32, i32, i32
  }
  func.func @transform_4(%arg0: i32, %arg1: memref<6x2xi32, #tpu.memory_space<smem>>) -> (i32, i32) {
    %c0_i32 = arith.constant 0 : i32
    %c0_i32_0 = arith.constant 0 : i32
    %c0_i32_1 = arith.constant 0 : i32
    return %c0_i32, %c0_i32_0 : i32, i32
  }
}

</mosaic_0001>

<bundles_post_ra>
// kernel: tpu_custom_call.1
= control target key start
LH: loop header
LB: loop body
LE: loop exit
PB: predicated region body
PF: predicated region fallthrough
CT: control target
= control target key end

     0   :  { %s997_s0 = inlined_call_operand.vmem [shape: s32[6,2], index: 0, kind: input, shape index: {}]   ;;  %s998_s1 = inlined_call_operand.hbm [shape: f32[6,2,2,128], index: 1, kind: input, shape index: {}]   ;;  %s999_s2 = inlined_call_operand.hbm [shape: f32[6,2,2,128], index: 2, kind: input, shape index: {}]   ;;  %s1000_s3 = inlined_call_operand.hbm [shape: f32[8,2,2,128], index: 3, kind: input, shape index: {}]   ;;  %s1001_s4 = inlined_call_operand.hbm [shape: f32[8,2,2,128], index: 4, kind: input, shape index: {}]   ;;  %s1002_s5 = inlined_call_operand.hbm [shape: f32[2,128], index: 5, kind: output, shape index: {}]  }
   0x1   :  { %s10_s20 = sshll.u32 %s997_s0, 4  ;;  %s11_s20 = int_to_ptr.vmem [resolvable:$true] %s10_s20 }
   0x2   :  { %s544_s21 = scalar_lea.vmem %s11_s20, 128  ;;  %p549_p1 = scmp.lt.s32.totalorder %s11_s20, %s11_s20 }
   0x3   :  { %p545_p0 = scmp.ne.s32.totalorder %s11_s20, %s544_s21  ;;  %p550_p2 = scmp.lt.s32.totalorder %s544_s21, %s544_s21 }
   0x5   :  { %p551_p3 = por %p550_p2, %p549_p1 }
   0x7   :  { %p552_p4 = pnand %p551_p3, %p545_p0 }
   0x9   :  { %555 = shalt.err (!%p552_p4)  }
   0xa   :  { %s742_s22 = smov [#allocation3]  }
   0xb   :  { %13 = dma.vmem_to_smem %s11_s20, 128, %s742_s22, [#allocation2] }
   0xc   :  { %704 = dma.done.wait [#allocation2], 128 }
   0xd   :  { %705 = vsyncadd [#allocation2], 4294967168 }
   0xe   :  { %15 = sfence }
   0xf   :  { %16 = vsyncpa [#allocation5], 0 }
  0x10   :  { %18 = vsyncpa [#allocation5 + $0x1], 0 }
  0x11   :  { %19 = vsyncpa [#allocation8], 0 }
  0x12   :  { %21 = vsyncpa [#allocation8 + $0x1], 0 }
  0x13   :  { %22 = vsyncpa [#allocation11], 0 }
  0x14   :  { %23 = vsyncpa [#allocation6], 0  ;;  %s784_s0 = smov 0   ;;  %s786_s23 = smov 0  }
  0x15   :  { %s788_s24 = smov 0   ;;  %s790_s25 = smov 0  }
  0x16 LB: > { %s803_s26 = sadd.s32 4294967295, %s740_s25   ;;  %p49_p5 = scmp.ne.s32.totalorder %s732_s23, %s728_s0  ;;  %s740_s25 = sphi %s790_s25, %s1018_s25   ;;  %s736_s24 = sphi %s788_s24, %s1017_s24   ;;  %s732_s23 = sphi %s786_s23, %s1016_s23   ;;  %s728_s0 = sphi %s784_s0, %s1015_s0  }
  0x17   : > { %p1003_p6 = scmp.eq.s32.totalorder %s803_s26, 0  ;;  %p443_p7 = scmp.ge.s32.totalorder %s740_s25, 1 }
  0x18   : > { %p149_p8 = scmp.lt.s32.totalorder %s740_s25, 7  ;;  %s743_s29 = smov [#allocation9]  }
  0x19   : > { %p812_p10 = por %p1003_p6, %p49_p5  ;;  %s161_s30 = sshll.u32 %s743_s29, 4  ;;  %s162_s30 = int_to_ptr.vmem [resolvable:$true] %s161_s30 }
  0x1a   : > { %p816_p11 = pnand %p443_p7, %p149_p8  ;;  %s744_s7 = smov [#allocation10]  }
  0x1b   : > { %s1005_s27 = scalar_select %p812_p10, 1, 0 }
  0x1c   : > { %p484_p12 = pneg %p816_p11  ;;  %s174_s8 = sshll.u32 %s744_s7, 4  ;;  %s175_s8 = int_to_ptr.vmem [resolvable:$true] %s174_s8 }
  0x1d   : > { %s567_s9 = scalar_lea.vmem %s162_s30, 512  ;;  %p575_p4 = scmp.lt.s32.totalorder %s162_s30, %s162_s30 }
  0x1e   : > { %p824_p13 = pnand %p484_p12, %p1003_p6  ;;  %p568_p1 = scmp.ne.s32.totalorder %s162_s30, %s567_s9 }
  0x1f   : > { %p576_p5 = scmp.lt.s32.totalorder %s567_s9, %s567_s9 }
  0x20   : > { %p558_p0 = pneg %p824_p13 }
  0x21   : > { %p577_p7 = por %p576_p5, %p575_p4 }
  0x22   : > { %p570_p2 = pnand %p568_p1, %p558_p0 }
  0x24   : > { %p571_p3 = pneg %p570_p2 }
  0x26   : > { %p578_p8 = pnand %p577_p7, %p571_p3 }
  0x28   : > { %581 = shalt.err (!%p578_p8)
}
  0x29   : > { %s745_s10 = smov 32   ;;  %s746_s11 = smov 2  }
  0x2a   : > { %487 = dma.hbm_to_vmem [thread:$0]  (!%p824_p13), %s1000_s3, 512, %s162_s30, [#allocation8], %s745_s10, %s745_s10, %s746_s11  }
  0x2b   : > { %s593_s14 = scalar_lea.vmem %s175_s8, 512  ;;  %p601_p3 = scmp.lt.s32.totalorder %s175_s8, %s175_s8 }
  0x2c   : > { %p594_p12 = scmp.ne.s32.totalorder %s175_s8, %s593_s14  ;;  %p602_p4 = scmp.lt.s32.totalorder %s593_s14, %s593_s14 }
  0x2e   : > { %p596_p1 = pnand %p594_p12, %p558_p0  ;;  %p603_p5 = por %p602_p4, %p601_p3 }
  0x30   : > { %p597_p2 = pneg %p596_p1 }
  0x32   : > { %p604_p7 = pnand %p603_p5, %p597_p2 }
  0x34   : > { %607 = shalt.err (!%p604_p7)
}
  0x35   : > { %490 = dma.hbm_to_vmem [thread:$0]  (!%p824_p13), %s1001_s4, 512, %s175_s8, [#allocation11], %s745_s10, %s745_s10, %s746_s11  }
  0x36   : > { %s853_s17 = sadd.s32 1, %s740_s25   ;;  %s36_s18 = sadd.s32 1, %s736_s24 }
  0x37   : > { %s33_s19 = ssub.s32 %s740_s25, %s853_s17  ;;  %p43_p0 = scmp.ne.s32.totalorder %s736_s24, %s732_s23 }
  0x38   : > { %p34_p8 = scmp.eq.s32.totalorder %s33_s19, 0  ;;  %p44_p12 = scmp.eq.s32.totalorder %s740_s25, 0 }
  0x39   : > { %p500_p1 = scmp.lt.s32.totalorder %s740_s25, 6  ;;  %s188_s20 = sand.u32 1, %s736_s24  }
  0x3a   : > { %s864_s21 = scalar_select %p34_p8, %s736_s24, %s36_s18  }
  0x3b   : > { %p45_p2 = por %p44_p12, %p43_p0  ;;  %s866_s22 = sshll.u32 %s188_s20, 2 }
  0x3c   : > { %s466_s0 = sshll.u32 %s740_s25, 6  ;;  %s192_s7 = scalar_lea.vmem [#allocation4], %s866_s22 }
  0x3d   : > { %s872_s6 = scalar_lea.hbm %s998_s1, %s466_s0  ;;  %s199_s8 = sshll.u32 %s192_s7, 4  ;;  %s879_s8 = int_to_ptr.vmem [resolvable:$true] %s199_s8 }
  0x3e   : > { %p875_p13 = pnand %p500_p1, %p45_p2  ;;  %s884_s14 = scalar_lea.hbm %s999_s2, %s466_s0 }
  0x3f   : > { %s886_s15 = scalar_lea.sflag [#allocation5], %s188_s20  ;;  %s608_s16 = scalar_lea.hbm %s872_s6, 64 }
  0x40   : > { %p609_p3 = scmp.ne.s32.totalorder %s872_s6, %s608_s16  ;;  %p610_p4 = pneg %p875_p13 }
  0x41   : > { %s613_s29 = scalar_lea.hbm %s998_s1, 384  ;;  %p614_p0 = scmp.lt.s32.totalorder %s872_s6, %s998_s1 }
  0x42   : > { %p611_p5 = pnand %p610_p4, %p609_p3  ;;  %p615_p8 = scmp.lt.s32.totalorder %s613_s29, %s608_s16 }
  0x44   : > { %p612_p7 = pneg %p611_p5  ;;  %p616_p12 = por %p615_p8, %p614_p0 }
  0x46   : > { %p617_p1 = pnand %p616_p12, %p612_p7 }
  0x48   : > { %620 = shalt.err (!%p617_p1)
}
  0x49   : > { %s621_s20 = scalar_lea.vmem %s879_s8, 64  ;;  %s747_s0 = smov [#allocation4]  }
  0x4a   : > { %p622_p2 = scmp.ne.s32.totalorder %s879_s8, %s621_s20  ;;  %s626_s12 = sshll.u32 %s747_s0, 4  ;;  %s627_s12 = int_to_ptr.vmem [resolvable:$false] %s626_s12 }
  0x4b   : > { %s628_s13 = scalar_lea.vmem %s627_s12, 128  ;;  %p629_p9 = scmp.lt.s32.totalorder %s879_s8, %s627_s12 }
  0x4c   : > { %p624_p3 = pnand %p622_p2, %p610_p4  ;;  %p630_p6 = scmp.lt.s32.totalorder %s628_s13, %s621_s20 }
  0x4e   : > { %p625_p5 = pneg %p624_p3  ;;  %p631_p10 = por %p630_p6, %p629_p9 }
  0x50   : > { %p632_p0 = pnand %p631_p10, %p625_p5 }
  0x52   : > { %635 = shalt.err (!%p632_p0)
}
  0x53   : > { %494 = dma.hbm_to_vmem [thread:$0]  (!%p875_p13), %s872_s6, 64, %s879_s8, %s886_s15, %s745_s10, %s745_s10, %s746_s11  }
  0x54   : > { %s213_s16 = scalar_lea.vmem [#allocation7], %s866_s22  ;;  %s209_s19 = sand.u32 1, %s740_s25  }
  0x55   : > { %s220_s18 = sshll.u32 %s213_s16, 4  ;;  %s210_s29 = scalar_lea.sflag [#allocation8], %s209_s19  ;;  %s918_s18 = int_to_ptr.vmem [resolvable:$true] %s220_s18 }
  0x56   : > { %s636_s30 = scalar_lea.hbm %s884_s14, 64  ;;  %s641_s0 = scalar_lea.hbm %s999_s2, 384 }
  0x57   : > { %p637_p6 = scmp.ne.s32.totalorder %s884_s14, %s636_s30  ;;  %p642_p7 = scmp.lt.s32.totalorder %s884_s14, %s999_s2 }
  0x58   : > { %p643_p8 = scmp.lt.s32.totalorder %s641_s0, %s636_s30 }
  0x59   : > { %p639_p9 = pnand %p637_p6, %p610_p4 }
  0x5a   : > { %p644_p12 = por %p643_p8, %p642_p7 }
  0x5b   : > { %p640_p10 = pneg %p639_p9 }
  0x5d   : > { %p645_p1 = pnand %p644_p12, %p640_p10 }
  0x5f   : > { %648 = shalt.err (!%p645_p1)
}
  0x60   : > { %s649_s25 = scalar_lea.vmem %s918_s18, 64  ;;  %s748_s22 = smov [#allocation7]  }
  0x61   : > { %p650_p2 = scmp.ne.s32.totalorder %s918_s18, %s649_s25  ;;  %s654_s6 = sshll.u32 %s748_s22, 4  ;;  %s655_s6 = int_to_ptr.vmem [resolvable:$false] %s654_s6 }
  0x62   : > { %s656_s8 = scalar_lea.vmem %s655_s6, 128  ;;  %p657_p0 = scmp.lt.s32.totalorder %s918_s18, %s655_s6 }
  0x63   : > { %p652_p3 = pnand %p650_p2, %p610_p4  ;;  %p658_p6 = scmp.lt.s32.totalorder %s656_s8, %s649_s25 }
  0x65   : > { %p653_p5 = pneg %p652_p3  ;;  %p659_p9 = por %p658_p6, %p657_p0 }
  0x67   : > { %p660_p7 = pnand %p659_p9, %p653_p5 }
  0x69   : > { %663 = shalt.err (!%p660_p7)
}
  0x6a   : > { %497 = dma.hbm_to_vmem [thread:$0]  (!%p875_p13), %s884_s14, 64, %s918_s18, %s210_s29, %s745_s10, %s745_s10, %s746_s11  }
  0x6b   : > { %232 = sbr.rel (%p816_p11) target bundleno = 164 (0xa4), region = 36  ;;  %s234_s15 = sand.u32 (!%p816_p11), 1, %s732_s23  }
  0x6c   : > { %s948_s16 = sshll.u32 (!%p816_p11), %s234_s15, 2  ;;  %s235_s19 = scalar_lea.sflag (!%p816_p11), [#allocation5], %s234_s15 }
  0x6d   : > { %s238_s30 = scalar_lea.vmem (!%p816_p11), [#allocation4], %s948_s16  ;;  %p1009_p4 = scmp.ne.s32.totalorder (!%p816_p11), %s1005_s27, 0 }
  0x70   : > { %707 = dma.done.wait (%p1009_p4), %s235_s19, 64  }
  0x71   : > { %709 = vsyncadd (%p1009_p4), %s235_s19, 4294967232  ;;  %s243_s10 = sand.u32 1, %s803_s26   ;;  %s247_s28 = scalar_lea.vmem [#allocation7], %s948_s16 }
  0x72   : > { %s244_s11 = scalar_lea.sflag [#allocation8], %s243_s10 }
  0x73   : > { %711 = dma.done.wait (%p1009_p4), %s244_s11, 64  }
  0x74   : > { %713 = vsyncadd (%p1009_p4), %s244_s11, 4294967232  ;;  %p1010_p11 = scmp.eq.s32.totalorder %s803_s26, 0 }
  0x76   : > { %715 = dma.done.wait (%p1010_p11), [#allocation8], 512   ;;  %p1011_p13 = pmov %p1010_p11 }
  0x77   : > { %p1012_p10 = pmov %p1010_p11 }
  0x78   : > { %717 = vsyncadd (%p1011_p13), [#allocation8], 4294966784 }
  0x79   : > { %719 = dma.done.wait (%p1012_p10), [#allocation11], 512   ;;  %p1013_p8 = pmov %p1012_p10 }
  0x7a   : > { %p1014_p12 = scmp.ne.s32.totalorder %s803_s26, 0 }
  0x7b   : > { %721 = vsyncadd (%p1013_p8), [#allocation11], 4294966784 }
  0x7c   : > { %283 = sbr.rel (%p1014_p12) target bundleno = 131 (0x83), region = 56 }
  0x81   : > { %v749_v0 = vmov 0.0  }
  0x82   : > { %284 = vst [vmem:[#allocation12] sm:$0x3] %v749_v0 }
  0x83 PF: > { %s459_s27 = sshll.u32 %s803_s26, 7  ;;  %v289_v1 = vld [vmem:[%s238_s30] sm:$0x3]  ;;  %v290_v2 = vld [vmem:[%s238_s30 + $0x2] sm:$0x3]  ;;  %s750_s25 = smov [#allocation12]  }
  0x84   : > { %s286_s9 = sld [smem:[#allocation3 + %s459_s27]]  ;;  %s287_s14 = sadd.s32 1, %s459_s27  ;;  %v291_v3 = vld [vmem:[%s247_s28] sm:$0x3]  ;;  %v292_v9 = vld [vmem:[%s247_s28 + $0x2] sm:$0x3] }
  0x85   : > { %s288_s18 = sld [smem:[#allocation3 + %s287_s14]]  ;;  %v307_v19 = vsub.f32 %v289_v1, %v291_v3  ;;  %v308_v20 = vsub.f32 %v290_v2, %v292_v9  ;;  %s342_s22 = sshll.u32 %s750_s25, 4  ;;  %s343_s22 = int_to_ptr.vmem [resolvable:$true] %s342_s22 }
  0x86   : > { %p503_p1 = scmp.eq.s32.totalorder %s803_s26, 5  ;;  %s664_s6 = scalar_lea.vmem %s343_s22, 32 }
  0x87   : > { %p665_p2 = scmp.ne.s32.totalorder %s343_s22, %s664_s6  ;;  %p671_p0 = scmp.lt.s32.totalorder %s343_s22, %s343_s22 }
  0x88   : > { %p672_p6 = scmp.lt.s32.totalorder %s664_s6, %s664_s6 }
  0x89   : > { %v329_v37 = vld [vmem:[#allocation12] sm:$0x3]  ;;  %p666_p3 = pnand %p665_p2, %p503_p1 }
  0x8a   : > { %s460_s29 = sshll.u32 %s286_s9, 2  ;;  %p673_p9 = por %p672_p6, %p671_p0 }
  0x8b   : > { %s461_s7 = sshll.u32 %s288_s18, 2  ;;  %s294_s20 = scalar_lea.vmem [#allocation9], %s460_s29 }
  0x8c   : > { %v295_v4 = vld [vmem:[%s294_s20] sm:$0x3]  ;;  %v296_v5 = vld [vmem:[%s294_s20 + $0x2] sm:$0x3]  ;;  %s298_s0 = scalar_lea.vmem [#allocation9], %s461_s7  ;;  %s301_s12 = scalar_lea.vmem [#allocation10], %s460_s29 }
  0x8d   : > { %v299_v6 = vld [vmem:[%s298_s0] sm:$0x3]  ;;  %v300_v7 = vld [vmem:[%s298_s0 + $0x2] sm:$0x3]  ;;  %s304_s13 = scalar_lea.vmem [#allocation10], %s461_s7  ;;  %p667_p5 = pneg %p666_p3 }
  0x8e   : > { %v302_v8 = vld [vmem:[%s301_s12] sm:$0x3]  ;;  %v303_v10 = vld [vmem:[%s301_s12 + $0x2] sm:$0x3] }
  0x8f   : > { %v309_v11 = vsub.f32 %v295_v4, %v302_v8  ;;  %v305_v12 = vld [vmem:[%s304_s13] sm:$0x3]  ;;  %v306_v13 = vld [vmem:[%s304_s13 + $0x2] sm:$0x3]  ;;  %v310_v14 = vsub.f32 %v296_v5, %v303_v10  ;;  %p674_p7 = pnand %p673_p9, %p667_p5 }
  0x90   : > { %v311_v15 = vsub.f32 %v299_v6, %v305_v12  ;;  %v312_v16 = vsub.f32 %v300_v7, %v306_v13 }
  0x91   : > { %v313_v17 = vmul.f32 %v309_v11, %v305_v12  ;;  %v317_v18 = vmul.f32 %v309_v11, %v306_v13  ;;  %v314_v21 = vmul.f32 %v310_v14, %v306_v13  ;;  %v316_v22 = vmul.f32 %v310_v14, %v305_v12 }
  0x92   : > { %v319_v23 = vmul.f32 %v311_v15, %v302_v8  ;;  %v320_v24 = vmul.f32 %v312_v16, %v303_v10  ;;  %v322_v25 = vmul.f32 %v311_v15, %v303_v10  ;;  %v323_v26 = vmul.f32 %v312_v16, %v302_v8 }
  0x93   : > { %v315_v27 = vadd.f32 %v314_v21, %v313_v17  ;;  %v318_v28 = vsub.f32 %v316_v22, %v317_v18 }
  0x94   : > { %v321_v29 = vadd.f32 %v320_v24, %v319_v23  ;;  %v324_v30 = vsub.f32 %v322_v25, %v323_v26 }
  0x95   : > { %v325_v31 = vsub.f32 %v307_v19, %v315_v27  ;;  %v327_v32 = vsub.f32 %v308_v20, %v318_v28 }
  0x97   : > { %v326_v33 = vsub.f32 %v325_v31, %v321_v29  ;;  %v328_v34 = vsub.f32 %v327_v32, %v324_v30 }
  0x99   : > { %v330_v35 = vmul.f32 %v326_v33, %v326_v33  ;;  %v331_v36 = vmul.f32 %v328_v34, %v328_v34 }
  0x9b   : > { %v332_v38 = vadd.f32 %v331_v36, %v330_v35 }
  0x9d   : > { %v333_v39 = vadd.f32 %v332_v38, %v329_v37 }
  0x9f   : > { %334 = vst [vmem:[#allocation12] sm:$0x3] %v333_v39 }
  0xa0   : > { %677 = shalt.err (!%p674_p7)
}
  0xa1   : > { %481 = dma.vmem_to_hbm [thread:$0]  (%p503_p1), %s343_s22, 32, %s1002_s5, [#allocation6]  }
  0xa2   : > { %723 = dma.done.wait (%p503_p1), [#allocation6], 32  }
  0xa3   : > { %725 = vsyncadd (%p503_p1), [#allocation6], 4294967264 }
  0xa4 PF: > { %p26_p4 = scmp.ge.s32.totalorder %s853_s17, 8   ;;  %s1015_s0 = smov %s732_s23 }
  0xa5   : > { %s1016_s23 = smov %s736_s24  ;;  %s1017_s24 = smov %s864_s21 }
  0xa6   : > { %s1018_s25 = smov %s853_s17  ;;  %28 = sbr.rel (!%p26_p4) target bundleno = 22 (0x16), region = 102 }
  0xab   :  { %355 = vsyncpa [#allocation5], 1 }
  0xac   :  { %357 = vsyncpa [#allocation5 + $0x1], 1 }
  0xad   :  { %358 = vsyncpa [#allocation8], 1 }
  0xae   :  { %360 = vsyncpa [#allocation8 + $0x1], 1 }
  0xaf   :  { %361 = vsyncpa [#allocation11], 1 }
  0xb0   :  { %362 = vsyncpa [#allocation6], 1 }
  0xb1   :  { %364 = vsyncpa [#allocation6 + $0x1], 1 }

</bundles_post_ra>
